<compile_context>
chip_gen: v5e
topology: v5e:2x2
jax: 0.10.0
libtpu: 0.0.40
codegen_flags: <defaults>
</compile_context>

<pallas_src>
import functools
import math

import jax
import jax.numpy as jnp
from jax.experimental import pallas as pl
from jax.experimental.pallas import tpu as pltpu


def _layernorm(h, gamma, beta, eps=1e-5):
    mu = jnp.mean(h, axis=-1, keepdims=True)
    var = jnp.mean((h - mu) ** 2, axis=-1, keepdims=True)
    return (h - mu) * jax.lax.rsqrt(var + eps) * gamma + beta


def _gelu_tanh(x):
    # GELU(approximate='tanh')
    c = math.sqrt(2.0 / math.pi)
    return 0.5 * x * (1.0 + jnp.tanh(c * (x + 0.044715 * x * x * x)))


def transformer_block_kernel(
    x_ref,
    ln1g_ref, ln1b_ref,
    wqkv_ref,
    wo_ref, bo_ref,
    ln2g_ref, ln2b_ref,
    w1_ref, b1_ref, w2_ref, b2_ref,
    o_ref,
    *, batch: int, seq_len: int, n_heads: int, d_h: int,
):
    B, T, H, dh = batch, seq_len, n_heads, d_h
    D = H * dh

    x = x_ref[...]                                   # (B*T, D) f32

    # ---- LayerNorm 1 ----
    h = _layernorm(x, ln1g_ref[0], ln1b_ref[0])

    # ---- fused QKV projection (qkv_bias = False), q pre-scaled by 1/sqrt(d_h) ----
    qkv = jnp.dot(h, wqkv_ref[...], preferred_element_type=jnp.float32)   # (B*T, 3D)
    inv_sqrt_dh = 1.0 / math.sqrt(dh)
    q = qkv[:, 0 * D:1 * D] * inv_sqrt_dh
    k = qkv[:, 1 * D:2 * D]
    v = qkv[:, 2 * D:3 * D]

    # ---- split heads into a (B*H, T, dh) batch (cheap sublane/lane slices + leading concat) ----
    def split_heads(t):
        parts = []
        for b in range(B):
            rows = t[b * T:(b + 1) * T, :]                              # (T, D)
            for hd in range(H):
                parts.append(rows[:, hd * dh:(hd + 1) * dh].reshape(1, T, dh))
        return jnp.concatenate(parts, axis=0)                           # (B*H, T, dh)

    qh, kh, vh = split_heads(q), split_heads(k), split_heads(v)

    # ---- additive causal mask bias (finite -> no -inf arithmetic edge cases) ----
    rows_i = jax.lax.broadcasted_iota(jnp.int32, (T, T), 0)
    cols_i = jax.lax.broadcasted_iota(jnp.int32, (T, T), 1)
    mask_bias = jnp.where(cols_i > rows_i, jnp.float32(-1e30), jnp.float32(0.0))

    # ---- batched attention over all (batch, head) pairs: two batched matmuls ----
    s = jnp.einsum('bqd,bkd->bqk', qh, kh,
                   preferred_element_type=jnp.float32)                  # (B*H, T, T)
    s = s + mask_bias[None, :, :]
    s = s - jnp.max(s, axis=-1, keepdims=True)
    e = jnp.exp(s)
    inv_den = pl.reciprocal(jnp.sum(e, axis=-1, keepdims=True), approx=True)
    w = e * inv_den                                                     # softmax weights
    ctx = jnp.einsum('bqk,bkd->bqd', w, vh,
                     preferred_element_type=jnp.float32)                # (B*H, T, dh)

    # ---- merge heads back to (B*T, D) ----
    ctx_rows = [jnp.concatenate([ctx[b * H + hd] for hd in range(H)], axis=-1)   # (T, D)
                for b in range(B)]
    ctx2 = jnp.concatenate(ctx_rows, axis=0)                            # (B*T, D)

    # ---- output projection + residual (dropout = identity) ----
    attn_out = jnp.dot(ctx2, wo_ref[...], preferred_element_type=jnp.float32) + bo_ref[0]
    x2 = x + attn_out

    # ---- LayerNorm 2 + MLP (Linear -> GELU(tanh) -> Linear) + residual ----
    h2 = _layernorm(x2, ln2g_ref[0], ln2b_ref[0])
    m = jnp.dot(h2, w1_ref[...], preferred_element_type=jnp.float32) + b1_ref[0]
    m = _gelu_tanh(m)
    m = jnp.dot(m, w2_ref[...], preferred_element_type=jnp.float32) + b2_ref[0]

    o_ref[...] = (x2 + m).astype(o_ref.dtype)


def transformer_block(x, params, *, n_heads: int):
    (ln1g, ln1b, wq, wk, wv, wo, bo, ln2g, ln2b, w1, b1, w2, b2) = params
    B, T, D = x.shape
    d_h = D // n_heads
    M = B * T

    # Fuse QKV weights in the wrapper (one-time, outside the kernel).
    wqkv = jnp.concatenate([wq, wk, wv], axis=1)         # (D, 3D)

    # Fold batch into the matmul M dimension; single grid step (no per-batch pipeline overhead).
    x2d = x.reshape(M, D)

    full = lambda shape: pl.BlockSpec(shape, lambda i: (0, 0))
    in_specs = [
        full((M, D)),                                    # x
        full((1, D)), full((1, D)),                      # ln1 gamma, beta
        full((D, 3 * D)),                                # fused Wqkv (in, out)
        full((D, D)), full((1, D)),                      # Wo, bo
        full((1, D)), full((1, D)),                      # ln2 gamma, beta
        full((D, 4 * D)), full((1, 4 * D)),              # W1, b1
        full((4 * D, D)), full((1, D)),                  # W2, b2
    ]

    # Advisory cost estimate for the XLA scheduler.
    flops = (2 * M * D * 3 * D                          # fused QKV
             + 2 * 2 * (B * n_heads) * T * T * d_h      # scores + ctx
             + 2 * M * D * D                            # output projection
             + 2 * 2 * M * D * 4 * D)                   # MLP
    transcendentals = B * n_heads * T * T + M * 4 * D + B * n_heads * T + 2 * M
    bytes_accessed = 4 * (2 * M * D + wqkv.size + wo.size + w1.size + w2.size
                          + 2 * D + D + 2 * D + 4 * D + D)

    kernel = functools.partial(transformer_block_kernel,
                               batch=B, seq_len=T, n_heads=n_heads, d_h=d_h)

    out2d = pl.pallas_call(
        kernel,
        out_shape=jax.ShapeDtypeStruct((M, D), x.dtype),
        grid=(1,),
        in_specs=in_specs,
        out_specs=pl.BlockSpec((M, D), lambda i: (0, 0)),
        compiler_params=pltpu.CompilerParams(dimension_semantics=("parallel",)),
        cost_estimate=pl.CostEstimate(flops=flops,
                                      transcendentals=transcendentals,
                                      bytes_accessed=bytes_accessed),
    )(x2d, ln1g, ln1b, wqkv, wo, bo, ln2g, ln2b, w1, b1, w2, b2)

    return out2d.reshape(B, T, D)


def _reference(x, params, n_heads):
    (ln1g, ln1b, wq, wk, wv, wo, bo, ln2g, ln2b, w1, b1, w2, b2) = params
    B, T, D = x.shape
    d_h = D // n_heads

    def ln(h, g, b):
        mu = h.mean(-1, keepdims=True)
        var = ((h - mu) ** 2).mean(-1, keepdims=True)
        return (h - mu) / jnp.sqrt(var + 1e-5) * g + b

    h = ln(x, ln1g[0], ln1b[0])
    q = (h @ wq).reshape(B, T, n_heads, d_h).transpose(0, 2, 1, 3)
    k = (h @ wk).reshape(B, T, n_heads, d_h).transpose(0, 2, 1, 3)
    v = (h @ wv).reshape(B, T, n_heads, d_h).transpose(0, 2, 1, 3)
    s = jnp.einsum("bhtd,bhsd->bhts", q, k)
    mask = jnp.triu(jnp.ones((T, T), bool), k=1)
    s = jnp.where(mask, -jnp.inf, s)
    w = jax.nn.softmax(s / math.sqrt(d_h), axis=-1)
    ctx = jnp.einsum("bhts,bhsd->bhtd", w, v).transpose(0, 2, 1, 3).reshape(B, T, D)
    x2 = x + ctx @ wo + bo[0]
    h2 = ln(x2, ln2g[0], ln2b[0])
    m = jax.nn.gelu(h2 @ w1 + b1[0], approximate=True) @ w2 + b2[0]
    return x2 + m


if __name__ == "__main__":
    # config: d_e=32, n_heads=4, context_length=8, qkv_bias=False, p_dropout=0.0
    B, T, D, n_heads = 2, 8, 32, 4
    key = jax.random.PRNGKey(0)
    keys = jax.random.split(key, 12)

    x = jax.random.normal(keys[0], (B, T, D), dtype=jnp.float32)

    def w(k, shape, scale=0.02):
        return scale * jax.random.normal(k, shape, dtype=jnp.float32)

    params = (
        1.0 + 0.1 * jax.random.normal(keys[7], (1, D), dtype=jnp.float32),   # ln1 gamma
        0.1 * jax.random.normal(keys[8], (1, D), dtype=jnp.float32),         # ln1 beta
        w(keys[1], (D, D)),                                                  # Wq (in, out)
        w(keys[2], (D, D)),                                                  # Wk
        w(keys[3], (D, D)),                                                  # Wv
        w(keys[4], (D, D)),                                                  # Wo
        w(keys[9], (1, D)),                                                  # bo
        1.0 + 0.1 * jax.random.normal(keys[10], (1, D), dtype=jnp.float32),  # ln2 gamma
        0.1 * jax.random.normal(keys[11], (1, D), dtype=jnp.float32),        # ln2 beta
        w(keys[5], (D, 4 * D)),                                              # W1
        w(keys[9], (1, 4 * D)),                                              # b1
        w(keys[6], (4 * D, D)),                                              # W2
        w(keys[10], (1, D)),                                                 # b2
    )

    out = transformer_block(x, params, n_heads=n_heads)
    out = jax.block_until_ready(out)

    ref = _reference(x, params, n_heads)
    assert jnp.allclose(out, ref, atol=1e-3, rtol=1e-3), "mismatch vs reference"

    print("KERNEL_OK")
</pallas_src>

<mosaic_0001>
module attributes {stable_mosaic.version = 11 : i64} {
  func.func @transformer_block_kernel(%arg0: i32, %arg1: memref<16x32xf32, #tpu.memory_space<vmem>>, %arg2: memref<1x32xf32, #tpu.memory_space<vmem>>, %arg3: memref<1x32xf32, #tpu.memory_space<vmem>>, %arg4: memref<32x96xf32, #tpu.memory_space<vmem>>, %arg5: memref<32x32xf32, #tpu.memory_space<vmem>>, %arg6: memref<1x32xf32, #tpu.memory_space<vmem>>, %arg7: memref<1x32xf32, #tpu.memory_space<vmem>>, %arg8: memref<1x32xf32, #tpu.memory_space<vmem>>, %arg9: memref<32x128xf32, #tpu.memory_space<vmem>>, %arg10: memref<1x128xf32, #tpu.memory_space<vmem>>, %arg11: memref<128x32xf32, #tpu.memory_space<vmem>>, %arg12: memref<1x32xf32, #tpu.memory_space<vmem>>, %arg13: memref<16x32xf32, #tpu.memory_space<vmem>>) attributes {dimension_semantics = [#tpu.dimension_semantics<parallel>], iteration_bounds = array<i64: 1>, scalar_prefetch = 0 : i64, scratch_operands = 0 : i64, tpu.core_type = #tpu.core_type<tc>, window_params = [{pipeline_mode = #tpu.pipeline_mode<synchronous>, transform_indices = @transform_0, window_bounds = array<i64: 16, 32>}, {pipeline_mode = #tpu.pipeline_mode<synchronous>, transform_indices = @transform_1, window_bounds = array<i64: 1, 32>}, {pipeline_mode = #tpu.pipeline_mode<synchronous>, transform_indices = @transform_2, window_bounds = array<i64: 1, 32>}, {pipeline_mode = #tpu.pipeline_mode<synchronous>, transform_indices = @transform_3, window_bounds = array<i64: 32, 96>}, {pipeline_mode = #tpu.pipeline_mode<synchronous>, transform_indices = @transform_4, window_bounds = array<i64: 32, 32>}, {pipeline_mode = #tpu.pipeline_mode<synchronous>, transform_indices = @transform_5, window_bounds = array<i64: 1, 32>}, {pipeline_mode = #tpu.pipeline_mode<synchronous>, transform_indices = @transform_6, window_bounds = array<i64: 1, 32>}, {pipeline_mode = #tpu.pipeline_mode<synchronous>, transform_indices = @transform_7, window_bounds = array<i64: 1, 32>}, {pipeline_mode = #tpu.pipeline_mode<synchronous>, transform_indices = @transform_8, window_bounds = array<i64: 32, 128>}, {pipeline_mode = #tpu.pipeline_mode<synchronous>, transform_indices = @transform_9, window_bounds = array<i64: 1, 128>}, {pipeline_mode = #tpu.pipeline_mode<synchronous>, transform_indices = @transform_10, window_bounds = array<i64: 128, 32>}, {pipeline_mode = #tpu.pipeline_mode<synchronous>, transform_indices = @transform_11, window_bounds = array<i64: 1, 32>}, {pipeline_mode = #tpu.pipeline_mode<synchronous>, transform_indices = @transform_12, window_bounds = array<i64: 16, 32>}]} {
    %c0 = arith.constant 0 : index
    %c0_0 = arith.constant 0 : index
    %0 = vector.load %arg1[%c0, %c0_0] : memref<16x32xf32, #tpu.memory_space<vmem>>, vector<16x32xf32>
    %c0_1 = arith.constant 0 : index
    %c0_2 = arith.constant 0 : index
    %1 = vector.load %arg2[%c0_1, %c0_2] : memref<1x32xf32, #tpu.memory_space<vmem>>, vector<1x32xf32>
    %2 = vector.shape_cast %1 : vector<1x32xf32> to vector<32xf32>
    %c0_3 = arith.constant 0 : index
    %c0_4 = arith.constant 0 : index
    %3 = vector.load %arg3[%c0_3, %c0_4] : memref<1x32xf32, #tpu.memory_space<vmem>>, vector<1x32xf32>
    %4 = vector.shape_cast %3 : vector<1x32xf32> to vector<32xf32>
    %cst = arith.constant dense<0.000000e+00> : vector<16xf32>
    %5 = vector.multi_reduction <add>, %0, %cst [1] : vector<16x32xf32> to vector<16xf32>
    %6 = vector.shape_cast %5 : vector<16xf32> to vector<16x1xf32>
    %cst_5 = arith.constant 3.200000e+01 : f32
    %7 = vector.broadcast %cst_5 : f32 to vector<16x1xf32>
    %8 = arith.divf %6, %7 : vector<16x1xf32>
    %9 = vector.broadcast %8 : vector<16x1xf32> to vector<16x32xf32>
    %10 = arith.subf %0, %9 : vector<16x32xf32>
    %11 = arith.mulf %10, %10 : vector<16x32xf32>
    %cst_6 = arith.constant dense<0.000000e+00> : vector<16xf32>
    %12 = vector.multi_reduction <add>, %11, %cst_6 [1] : vector<16x32xf32> to vector<16xf32>
    %13 = vector.shape_cast %12 : vector<16xf32> to vector<16x1xf32>
    %cst_7 = arith.constant 3.200000e+01 : f32
    %14 = vector.broadcast %cst_7 : f32 to vector<16x1xf32>
    %15 = arith.divf %13, %14 : vector<16x1xf32>
    %16 = vector.broadcast %8 : vector<16x1xf32> to vector<16x32xf32>
    %17 = arith.subf %0, %16 : vector<16x32xf32>
    %cst_8 = arith.constant 9.99999974E-6 : f32
    %18 = vector.broadcast %cst_8 : f32 to vector<16x1xf32>
    %19 = arith.addf %15, %18 : vector<16x1xf32>
    %20 = math.rsqrt %19 : vector<16x1xf32>
    %21 = vector.broadcast %20 : vector<16x1xf32> to vector<16x32xf32>
    %22 = arith.mulf %17, %21 : vector<16x32xf32>
    %23 = vector.shape_cast %2 : vector<32xf32> to vector<1x32xf32>
    %24 = vector.broadcast %23 : vector<1x32xf32> to vector<16x32xf32>
    %25 = arith.mulf %22, %24 : vector<16x32xf32>
    %26 = vector.shape_cast %4 : vector<32xf32> to vector<1x32xf32>
    %27 = vector.broadcast %26 : vector<1x32xf32> to vector<16x32xf32>
    %28 = arith.addf %25, %27 : vector<16x32xf32>
    %c0_9 = arith.constant 0 : index
    %c0_10 = arith.constant 0 : index
    %29 = vector.load %arg4[%c0_9, %c0_10] : memref<32x96xf32, #tpu.memory_space<vmem>>, vector<32x96xf32>
    %cst_11 = arith.constant dense<0.000000e+00> : vector<16x96xf32>
    %30 = tpu.matmul %28, %29, %cst_11 {dimension_numbers = #tpu.dot_dimension_numbers<[1], [0], [0], [1], [0, 0, 1, 1], [], []>} : vector<16x32xf32>, vector<32x96xf32>, vector<16x96xf32> -> vector<16x96xf32>
    %31 = vector.extract_strided_slice %30 {offsets = [0, 0], sizes = [16, 32], strides = [1, 1]} : vector<16x96xf32> to vector<16x32xf32>
    %cst_12 = arith.constant 0.353553385 : f32
    %32 = vector.broadcast %cst_12 : f32 to vector<16x32xf32>
    %33 = arith.mulf %31, %32 : vector<16x32xf32>
    %34 = vector.extract_strided_slice %30 {offsets = [0, 32], sizes = [16, 32], strides = [1, 1]} : vector<16x96xf32> to vector<16x32xf32>
    %35 = vector.extract_strided_slice %30 {offsets = [0, 64], sizes = [16, 32], strides = [1, 1]} : vector<16x96xf32> to vector<16x32xf32>
    %36 = vector.extract_strided_slice %33 {offsets = [0, 0], sizes = [8, 32], strides = [1, 1]} : vector<16x32xf32> to vector<8x32xf32>
    %37 = vector.extract_strided_slice %36 {offsets = [0, 0], sizes = [8, 8], strides = [1, 1]} : vector<8x32xf32> to vector<8x8xf32>
    %38 = vector.shape_cast %37 : vector<8x8xf32> to vector<1x8x8xf32>
    %39 = vector.extract_strided_slice %36 {offsets = [0, 8], sizes = [8, 8], strides = [1, 1]} : vector<8x32xf32> to vector<8x8xf32>
    %40 = vector.shape_cast %39 : vector<8x8xf32> to vector<1x8x8xf32>
    %41 = vector.extract_strided_slice %36 {offsets = [0, 16], sizes = [8, 8], strides = [1, 1]} : vector<8x32xf32> to vector<8x8xf32>
    %42 = vector.shape_cast %41 : vector<8x8xf32> to vector<1x8x8xf32>
    %43 = vector.extract_strided_slice %36 {offsets = [0, 24], sizes = [8, 8], strides = [1, 1]} : vector<8x32xf32> to vector<8x8xf32>
    %44 = vector.shape_cast %43 : vector<8x8xf32> to vector<1x8x8xf32>
    %45 = vector.extract_strided_slice %33 {offsets = [8, 0], sizes = [8, 32], strides = [1, 1]} : vector<16x32xf32> to vector<8x32xf32>
    %46 = vector.extract_strided_slice %45 {offsets = [0, 0], sizes = [8, 8], strides = [1, 1]} : vector<8x32xf32> to vector<8x8xf32>
    %47 = vector.shape_cast %46 : vector<8x8xf32> to vector<1x8x8xf32>
    %48 = vector.extract_strided_slice %45 {offsets = [0, 8], sizes = [8, 8], strides = [1, 1]} : vector<8x32xf32> to vector<8x8xf32>
    %49 = vector.shape_cast %48 : vector<8x8xf32> to vector<1x8x8xf32>
    %50 = vector.extract_strided_slice %45 {offsets = [0, 16], sizes = [8, 8], strides = [1, 1]} : vector<8x32xf32> to vector<8x8xf32>
    %51 = vector.shape_cast %50 : vector<8x8xf32> to vector<1x8x8xf32>
    %52 = vector.extract_strided_slice %45 {offsets = [0, 24], sizes = [8, 8], strides = [1, 1]} : vector<8x32xf32> to vector<8x8xf32>
    %53 = vector.shape_cast %52 : vector<8x8xf32> to vector<1x8x8xf32>
    %54 = tpu.concatenate %38, %40, %42, %44, %47, %49, %51, %53 in 0 : vector<1x8x8xf32>, vector<1x8x8xf32>, vector<1x8x8xf32>, vector<1x8x8xf32>, vector<1x8x8xf32>, vector<1x8x8xf32>, vector<1x8x8xf32>, vector<1x8x8xf32> -> vector<8x8x8xf32>
    %55 = vector.extract_strided_slice %34 {offsets = [0, 0], sizes = [8, 32], strides = [1, 1]} : vector<16x32xf32> to vector<8x32xf32>
    %56 = vector.extract_strided_slice %55 {offsets = [0, 0], sizes = [8, 8], strides = [1, 1]} : vector<8x32xf32> to vector<8x8xf32>
    %57 = vector.shape_cast %56 : vector<8x8xf32> to vector<1x8x8xf32>
    %58 = vector.extract_strided_slice %55 {offsets = [0, 8], sizes = [8, 8], strides = [1, 1]} : vector<8x32xf32> to vector<8x8xf32>
    %59 = vector.shape_cast %58 : vector<8x8xf32> to vector<1x8x8xf32>
    %60 = vector.extract_strided_slice %55 {offsets = [0, 16], sizes = [8, 8], strides = [1, 1]} : vector<8x32xf32> to vector<8x8xf32>
    %61 = vector.shape_cast %60 : vector<8x8xf32> to vector<1x8x8xf32>
    %62 = vector.extract_strided_slice %55 {offsets = [0, 24], sizes = [8, 8], strides = [1, 1]} : vector<8x32xf32> to vector<8x8xf32>
    %63 = vector.shape_cast %62 : vector<8x8xf32> to vector<1x8x8xf32>
    %64 = vector.extract_strided_slice %34 {offsets = [8, 0], sizes = [8, 32], strides = [1, 1]} : vector<16x32xf32> to vector<8x32xf32>
    %65 = vector.extract_strided_slice %64 {offsets = [0, 0], sizes = [8, 8], strides = [1, 1]} : vector<8x32xf32> to vector<8x8xf32>
    %66 = vector.shape_cast %65 : vector<8x8xf32> to vector<1x8x8xf32>
    %67 = vector.extract_strided_slice %64 {offsets = [0, 8], sizes = [8, 8], strides = [1, 1]} : vector<8x32xf32> to vector<8x8xf32>
    %68 = vector.shape_cast %67 : vector<8x8xf32> to vector<1x8x8xf32>
    %69 = vector.extract_strided_slice %64 {offsets = [0, 16], sizes = [8, 8], strides = [1, 1]} : vector<8x32xf32> to vector<8x8xf32>
    %70 = vector.shape_cast %69 : vector<8x8xf32> to vector<1x8x8xf32>
    %71 = vector.extract_strided_slice %64 {offsets = [0, 24], sizes = [8, 8], strides = [1, 1]} : vector<8x32xf32> to vector<8x8xf32>
    %72 = vector.shape_cast %71 : vector<8x8xf32> to vector<1x8x8xf32>
    %73 = tpu.concatenate %57, %59, %61, %63, %66, %68, %70, %72 in 0 : vector<1x8x8xf32>, vector<1x8x8xf32>, vector<1x8x8xf32>, vector<1x8x8xf32>, vector<1x8x8xf32>, vector<1x8x8xf32>, vector<1x8x8xf32>, vector<1x8x8xf32> -> vector<8x8x8xf32>
    %74 = vector.extract_strided_slice %35 {offsets = [0, 0], sizes = [8, 32], strides = [1, 1]} : vector<16x32xf32> to vector<8x32xf32>
    %75 = vector.extract_strided_slice %74 {offsets = [0, 0], sizes = [8, 8], strides = [1, 1]} : vector<8x32xf32> to vector<8x8xf32>
    %76 = vector.shape_cast %75 : vector<8x8xf32> to vector<1x8x8xf32>
    %77 = vector.extract_strided_slice %74 {offsets = [0, 8], sizes = [8, 8], strides = [1, 1]} : vector<8x32xf32> to vector<8x8xf32>
    %78 = vector.shape_cast %77 : vector<8x8xf32> to vector<1x8x8xf32>
    %79 = vector.extract_strided_slice %74 {offsets = [0, 16], sizes = [8, 8], strides = [1, 1]} : vector<8x32xf32> to vector<8x8xf32>
    %80 = vector.shape_cast %79 : vector<8x8xf32> to vector<1x8x8xf32>
    %81 = vector.extract_strided_slice %74 {offsets = [0, 24], sizes = [8, 8], strides = [1, 1]} : vector<8x32xf32> to vector<8x8xf32>
    %82 = vector.shape_cast %81 : vector<8x8xf32> to vector<1x8x8xf32>
    %83 = vector.extract_strided_slice %35 {offsets = [8, 0], sizes = [8, 32], strides = [1, 1]} : vector<16x32xf32> to vector<8x32xf32>
    %84 = vector.extract_strided_slice %83 {offsets = [0, 0], sizes = [8, 8], strides = [1, 1]} : vector<8x32xf32> to vector<8x8xf32>
    %85 = vector.shape_cast %84 : vector<8x8xf32> to vector<1x8x8xf32>
    %86 = vector.extract_strided_slice %83 {offsets = [0, 8], sizes = [8, 8], strides = [1, 1]} : vector<8x32xf32> to vector<8x8xf32>
    %87 = vector.shape_cast %86 : vector<8x8xf32> to vector<1x8x8xf32>
    %88 = vector.extract_strided_slice %83 {offsets = [0, 16], sizes = [8, 8], strides = [1, 1]} : vector<8x32xf32> to vector<8x8xf32>
    %89 = vector.shape_cast %88 : vector<8x8xf32> to vector<1x8x8xf32>
    %90 = vector.extract_strided_slice %83 {offsets = [0, 24], sizes = [8, 8], strides = [1, 1]} : vector<8x32xf32> to vector<8x8xf32>
    %91 = vector.shape_cast %90 : vector<8x8xf32> to vector<1x8x8xf32>
    %92 = tpu.concatenate %76, %78, %80, %82, %85, %87, %89, %91 in 0 : vector<1x8x8xf32>, vector<1x8x8xf32>, vector<1x8x8xf32>, vector<1x8x8xf32>, vector<1x8x8xf32>, vector<1x8x8xf32>, vector<1x8x8xf32>, vector<1x8x8xf32> -> vector<8x8x8xf32>
    %93 = tpu.iota {dimensions = array<i32: 0>} : vector<8x8xi32>
    %94 = tpu.iota {dimensions = array<i32: 1>} : vector<8x8xi32>
    %95 = arith.cmpi sgt, %94, %93 : vector<8x8xi32>
    %cst_13 = arith.constant -1.000000e+30 : f32
    %cst_14 = arith.constant 0.000000e+00 : f32
    %96 = vector.broadcast %cst_13 : f32 to vector<8x8xf32>
    %97 = vector.broadcast %cst_14 : f32 to vector<8x8xf32>
    %98 = arith.select %95, %96, %97 : vector<8x8xi1>, vector<8x8xf32>
    "tpu.trace_start"() <{level = 10 : i32, message = "bqd,bkd->bqk"}> : () -> ()
    %cst_15 = arith.constant dense<0.000000e+00> : vector<8x8x8xf32>
    %99 = tpu.matmul %54, %73, %cst_15 {dimension_numbers = #tpu.dot_dimension_numbers<[2], [2], [1], [1], [0, 0, 0, 1, 1, 1], [0], [0]>} : vector<8x8x8xf32>, vector<8x8x8xf32>, vector<8x8x8xf32> -> vector<8x8x8xf32>
    "tpu.trace_stop"() : () -> ()
    %100 = vector.shape_cast %98 : vector<8x8xf32> to vector<1x8x8xf32>
    %101 = vector.broadcast %100 : vector<1x8x8xf32> to vector<8x8x8xf32>
    %102 = arith.addf %99, %101 : vector<8x8x8xf32>
    %cst_16 = arith.constant dense<0xFF800000> : vector<8x8xf32>
    %103 = vector.multi_reduction <maximumf>, %102, %cst_16 [2] : vector<8x8x8xf32> to vector<8x8xf32>
    %104 = vector.shape_cast %103 : vector<8x8xf32> to vector<8x8x1xf32>
    %105 = vector.broadcast %104 : vector<8x8x1xf32> to vector<8x8x8xf32>
    %106 = arith.subf %102, %105 : vector<8x8x8xf32>
    %107 = math.exp %106 : vector<8x8x8xf32>
    %cst_17 = arith.constant dense<0.000000e+00> : vector<8x8xf32>
    %108 = vector.multi_reduction <add>, %107, %cst_17 [2] : vector<8x8x8xf32> to vector<8x8xf32>
    %109 = vector.shape_cast %108 : vector<8x8xf32> to vector<8x8x1xf32>
    %110 = tpu.reciprocal %109 {approx = true} : vector<8x8x1xf32> -> vector<8x8x1xf32>
    %111 = vector.broadcast %110 : vector<8x8x1xf32> to vector<8x8x8xf32>
    %112 = arith.mulf %107, %111 : vector<8x8x8xf32>
    "tpu.trace_start"() <{level = 10 : i32, message = "bqk,bkd->bqd"}> : () -> ()
    %cst_18 = arith.constant dense<0.000000e+00> : vector<8x8x8xf32>
    %113 = tpu.matmul %112, %92, %cst_18 {dimension_numbers = #tpu.dot_dimension_numbers<[2], [1], [1], [2], [0, 0, 0, 1, 1, 2], [0], [0]>} : vector<8x8x8xf32>, vector<8x8x8xf32>, vector<8x8x8xf32> -> vector<8x8x8xf32>
    "tpu.trace_stop"() : () -> ()
    %114 = vector.extract_strided_slice %113 {offsets = [0, 0, 0], sizes = [1, 8, 8], strides = [1, 1, 1]} : vector<8x8x8xf32> to vector<1x8x8xf32>
    %115 = vector.shape_cast %114 : vector<1x8x8xf32> to vector<8x8xf32>
    %116 = vector.extract_strided_slice %113 {offsets = [1, 0, 0], sizes = [1, 8, 8], strides = [1, 1, 1]} : vector<8x8x8xf32> to vector<1x8x8xf32>
    %117 = vector.shape_cast %116 : vector<1x8x8xf32> to vector<8x8xf32>
    %118 = vector.extract_strided_slice %113 {offsets = [2, 0, 0], sizes = [1, 8, 8], strides = [1, 1, 1]} : vector<8x8x8xf32> to vector<1x8x8xf32>
    %119 = vector.shape_cast %118 : vector<1x8x8xf32> to vector<8x8xf32>
    %120 = vector.extract_strided_slice %113 {offsets = [3, 0, 0], sizes = [1, 8, 8], strides = [1, 1, 1]} : vector<8x8x8xf32> to vector<1x8x8xf32>
    %121 = vector.shape_cast %120 : vector<1x8x8xf32> to vector<8x8xf32>
    %122 = tpu.concatenate %115, %117, %119, %121 in 1 : vector<8x8xf32>, vector<8x8xf32>, vector<8x8xf32>, vector<8x8xf32> -> vector<8x32xf32>
    %123 = vector.extract_strided_slice %113 {offsets = [4, 0, 0], sizes = [1, 8, 8], strides = [1, 1, 1]} : vector<8x8x8xf32> to vector<1x8x8xf32>
    %124 = vector.shape_cast %123 : vector<1x8x8xf32> to vector<8x8xf32>
    %125 = vector.extract_strided_slice %113 {offsets = [5, 0, 0], sizes = [1, 8, 8], strides = [1, 1, 1]} : vector<8x8x8xf32> to vector<1x8x8xf32>
    %126 = vector.shape_cast %125 : vector<1x8x8xf32> to vector<8x8xf32>
    %127 = vector.extract_strided_slice %113 {offsets = [6, 0, 0], sizes = [1, 8, 8], strides = [1, 1, 1]} : vector<8x8x8xf32> to vector<1x8x8xf32>
    %128 = vector.shape_cast %127 : vector<1x8x8xf32> to vector<8x8xf32>
    %129 = vector.extract_strided_slice %113 {offsets = [7, 0, 0], sizes = [1, 8, 8], strides = [1, 1, 1]} : vector<8x8x8xf32> to vector<1x8x8xf32>
    %130 = vector.shape_cast %129 : vector<1x8x8xf32> to vector<8x8xf32>
    %131 = tpu.concatenate %124, %126, %128, %130 in 1 : vector<8x8xf32>, vector<8x8xf32>, vector<8x8xf32>, vector<8x8xf32> -> vector<8x32xf32>
    %132 = tpu.concatenate %122, %131 in 0 : vector<8x32xf32>, vector<8x32xf32> -> vector<16x32xf32>
    %c0_19 = arith.constant 0 : index
    %c0_20 = arith.constant 0 : index
    %133 = vector.load %arg5[%c0_19, %c0_20] : memref<32x32xf32, #tpu.memory_space<vmem>>, vector<32x32xf32>
    %cst_21 = arith.constant dense<0.000000e+00> : vector<16x32xf32>
    %134 = tpu.matmul %132, %133, %cst_21 {dimension_numbers = #tpu.dot_dimension_numbers<[1], [0], [0], [1], [0, 0, 1, 1], [], []>} : vector<16x32xf32>, vector<32x32xf32>, vector<16x32xf32> -> vector<16x32xf32>
    %c0_22 = arith.constant 0 : index
    %c0_23 = arith.constant 0 : index
    %135 = vector.load %arg6[%c0_22, %c0_23] : memref<1x32xf32, #tpu.memory_space<vmem>>, vector<1x32xf32>
    %136 = vector.shape_cast %135 : vector<1x32xf32> to vector<32xf32>
    %137 = vector.shape_cast %136 : vector<32xf32> to vector<1x32xf32>
    %138 = vector.broadcast %137 : vector<1x32xf32> to vector<16x32xf32>
    %139 = arith.addf %134, %138 : vector<16x32xf32>
    %140 = arith.addf %0, %139 : vector<16x32xf32>
    %c0_24 = arith.constant 0 : index
    %c0_25 = arith.constant 0 : index
    %141 = vector.load %arg7[%c0_24, %c0_25] : memref<1x32xf32, #tpu.memory_space<vmem>>, vector<1x32xf32>
    %142 = vector.shape_cast %141 : vector<1x32xf32> to vector<32xf32>
    %c0_26 = arith.constant 0 : index
    %c0_27 = arith.constant 0 : index
    %143 = vector.load %arg8[%c0_26, %c0_27] : memref<1x32xf32, #tpu.memory_space<vmem>>, vector<1x32xf32>
    %144 = vector.shape_cast %143 : vector<1x32xf32> to vector<32xf32>
    %cst_28 = arith.constant dense<0.000000e+00> : vector<16xf32>
    %145 = vector.multi_reduction <add>, %140, %cst_28 [1] : vector<16x32xf32> to vector<16xf32>
    %146 = vector.shape_cast %145 : vector<16xf32> to vector<16x1xf32>
    %cst_29 = arith.constant 3.200000e+01 : f32
    %147 = vector.broadcast %cst_29 : f32 to vector<16x1xf32>
    %148 = arith.divf %146, %147 : vector<16x1xf32>
    %149 = vector.broadcast %148 : vector<16x1xf32> to vector<16x32xf32>
    %150 = arith.subf %140, %149 : vector<16x32xf32>
    %151 = arith.mulf %150, %150 : vector<16x32xf32>
    %cst_30 = arith.constant dense<0.000000e+00> : vector<16xf32>
    %152 = vector.multi_reduction <add>, %151, %cst_30 [1] : vector<16x32xf32> to vector<16xf32>
    %153 = vector.shape_cast %152 : vector<16xf32> to vector<16x1xf32>
    %cst_31 = arith.constant 3.200000e+01 : f32
    %154 = vector.broadcast %cst_31 : f32 to vector<16x1xf32>
    %155 = arith.divf %153, %154 : vector<16x1xf32>
    %156 = vector.broadcast %148 : vector<16x1xf32> to vector<16x32xf32>
    %157 = arith.subf %140, %156 : vector<16x32xf32>
    %cst_32 = arith.constant 9.99999974E-6 : f32
    %158 = vector.broadcast %cst_32 : f32 to vector<16x1xf32>
    %159 = arith.addf %155, %158 : vector<16x1xf32>
    %160 = math.rsqrt %159 : vector<16x1xf32>
    %161 = vector.broadcast %160 : vector<16x1xf32> to vector<16x32xf32>
    %162 = arith.mulf %157, %161 : vector<16x32xf32>
    %163 = vector.shape_cast %142 : vector<32xf32> to vector<1x32xf32>
    %164 = vector.broadcast %163 : vector<1x32xf32> to vector<16x32xf32>
    %165 = arith.mulf %162, %164 : vector<16x32xf32>
    %166 = vector.shape_cast %144 : vector<32xf32> to vector<1x32xf32>
    %167 = vector.broadcast %166 : vector<1x32xf32> to vector<16x32xf32>
    %168 = arith.addf %165, %167 : vector<16x32xf32>
    %c0_33 = arith.constant 0 : index
    %c0_34 = arith.constant 0 : index
    %169 = vector.load %arg9[%c0_33, %c0_34] : memref<32x128xf32, #tpu.memory_space<vmem>>, vector<32x128xf32>
    %cst_35 = arith.constant dense<0.000000e+00> : vector<16x128xf32>
    %170 = tpu.matmul %168, %169, %cst_35 {dimension_numbers = #tpu.dot_dimension_numbers<[1], [0], [0], [1], [0, 0, 1, 1], [], []>} : vector<16x32xf32>, vector<32x128xf32>, vector<16x128xf32> -> vector<16x128xf32>
    %c0_36 = arith.constant 0 : index
    %c0_37 = arith.constant 0 : index
    %171 = vector.load %arg10[%c0_36, %c0_37] : memref<1x128xf32, #tpu.memory_space<vmem>>, vector<1x128xf32>
    %172 = vector.shape_cast %171 : vector<1x128xf32> to vector<128xf32>
    %173 = vector.shape_cast %172 : vector<128xf32> to vector<1x128xf32>
    %174 = vector.broadcast %173 : vector<1x128xf32> to vector<16x128xf32>
    %175 = arith.addf %170, %174 : vector<16x128xf32>
    %cst_38 = arith.constant 5.000000e-01 : f32
    %176 = vector.broadcast %cst_38 : f32 to vector<16x128xf32>
    %177 = arith.mulf %176, %175 : vector<16x128xf32>
    %cst_39 = arith.constant 4.471500e-02 : f32
    %178 = vector.broadcast %cst_39 : f32 to vector<16x128xf32>
    %179 = arith.mulf %178, %175 : vector<16x128xf32>
    %180 = arith.mulf %179, %175 : vector<16x128xf32>
    %181 = arith.mulf %180, %175 : vector<16x128xf32>
    %182 = arith.addf %175, %181 : vector<16x128xf32>
    %cst_40 = arith.constant 0.797884583 : f32
    %183 = vector.broadcast %cst_40 : f32 to vector<16x128xf32>
    %184 = arith.mulf %183, %182 : vector<16x128xf32>
    %185 = math.tanh %184 : vector<16x128xf32>
    %cst_41 = arith.constant 1.000000e+00 : f32
    %186 = vector.broadcast %cst_41 : f32 to vector<16x128xf32>
    %187 = arith.addf %186, %185 : vector<16x128xf32>
    %188 = arith.mulf %177, %187 : vector<16x128xf32>
    %c0_42 = arith.constant 0 : index
    %c0_43 = arith.constant 0 : index
    %189 = vector.load %arg11[%c0_42, %c0_43] : memref<128x32xf32, #tpu.memory_space<vmem>>, vector<128x32xf32>
    %cst_44 = arith.constant dense<0.000000e+00> : vector<16x32xf32>
    %190 = tpu.matmul %188, %189, %cst_44 {dimension_numbers = #tpu.dot_dimension_numbers<[1], [0], [0], [1], [0, 0, 1, 1], [], []>} : vector<16x128xf32>, vector<128x32xf32>, vector<16x32xf32> -> vector<16x32xf32>
    %c0_45 = arith.constant 0 : index
    %c0_46 = arith.constant 0 : index
    %191 = vector.load %arg12[%c0_45, %c0_46] : memref<1x32xf32, #tpu.memory_space<vmem>>, vector<1x32xf32>
    %192 = vector.shape_cast %191 : vector<1x32xf32> to vector<32xf32>
    %193 = vector.shape_cast %192 : vector<32xf32> to vector<1x32xf32>
    %194 = vector.broadcast %193 : vector<1x32xf32> to vector<16x32xf32>
    %195 = arith.addf %190, %194 : vector<16x32xf32>
    %196 = arith.addf %140, %195 : vector<16x32xf32>
    %c0_47 = arith.constant 0 : index
    %c0_48 = arith.constant 0 : index
    %197 = vector.load %arg13[%c0_47, %c0_48] : memref<16x32xf32, #tpu.memory_space<vmem>>, vector<16x32xf32>
    tpu.vector_store %arg13[%c0_47, %c0_48], %196 {strides = array<i32>} : memref<16x32xf32, #tpu.memory_space<vmem>>, vector<16x32xf32>,
    return
  }
  func.func @transform_0(%arg0: i32) -> (i32, i32) {
    %c0_i32 = arith.constant 0 : i32
    %c0_i32_0 = arith.constant 0 : i32
    %c0_i32_1 = arith.constant 0 : i32
    return %c0_i32, %c0_i32_0 : i32, i32
  }
  func.func @transform_1(%arg0: i32) -> (i32, i32) {
    %c0_i32 = arith.constant 0 : i32
    %c0_i32_0 = arith.constant 0 : i32
    %c0_i32_1 = arith.constant 0 : i32
    return %c0_i32, %c0_i32_0 : i32, i32
  }
  func.func @transform_2(%arg0: i32) -> (i32, i32) {
    %c0_i32 = arith.constant 0 : i32
    %c0_i32_0 = arith.constant 0 : i32
    %c0_i32_1 = arith.constant 0 : i32
    return %c0_i32, %c0_i32_0 : i32, i32
  }
  func.func @transform_3(%arg0: i32) -> (i32, i32) {
    %c0_i32 = arith.constant 0 : i32
    %c0_i32_0 = arith.constant 0 : i32
    %c0_i32_1 = arith.constant 0 : i32
    return %c0_i32, %c0_i32_0 : i32, i32
  }
  func.func @transform_4(%arg0: i32) -> (i32, i32) {
    %c0_i32 = arith.constant 0 : i32
    %c0_i32_0 = arith.constant 0 : i32
    %c0_i32_1 = arith.constant 0 : i32
    return %c0_i32, %c0_i32_0 : i32, i32
  }
  func.func @transform_5(%arg0: i32) -> (i32, i32) {
    %c0_i32 = arith.constant 0 : i32
    %c0_i32_0 = arith.constant 0 : i32
    %c0_i32_1 = arith.constant 0 : i32
    return %c0_i32, %c0_i32_0 : i32, i32
  }
  func.func @transform_6(%arg0: i32) -> (i32, i32) {
    %c0_i32 = arith.constant 0 : i32
    %c0_i32_0 = arith.constant 0 : i32
    %c0_i32_1 = arith.constant 0 : i32
    return %c0_i32, %c0_i32_0 : i32, i32
  }
  func.func @transform_7(%arg0: i32) -> (i32, i32) {
    %c0_i32 = arith.constant 0 : i32
    %c0_i32_0 = arith.constant 0 : i32
    %c0_i32_1 = arith.constant 0 : i32
    return %c0_i32, %c0_i32_0 : i32, i32
  }
  func.func @transform_8(%arg0: i32) -> (i32, i32) {
    %c0_i32 = arith.constant 0 : i32
    %c0_i32_0 = arith.constant 0 : i32
    %c0_i32_1 = arith.constant 0 : i32
    return %c0_i32, %c0_i32_0 : i32, i32
  }
  func.func @transform_9(%arg0: i32) -> (i32, i32) {
    %c0_i32 = arith.constant 0 : i32
    %c0_i32_0 = arith.constant 0 : i32
    %c0_i32_1 = arith.constant 0 : i32
    return %c0_i32, %c0_i32_0 : i32, i32
  }
  func.func @transform_10(%arg0: i32) -> (i32, i32) {
    %c0_i32 = arith.constant 0 : i32
    %c0_i32_0 = arith.constant 0 : i32
    %c0_i32_1 = arith.constant 0 : i32
    return %c0_i32, %c0_i32_0 : i32, i32
  }
  func.func @transform_11(%arg0: i32) -> (i32, i32) {
    %c0_i32 = arith.constant 0 : i32
    %c0_i32_0 = arith.constant 0 : i32
    %c0_i32_1 = arith.constant 0 : i32
    return %c0_i32, %c0_i32_0 : i32, i32
  }
  func.func @transform_12(%arg0: i32) -> (i32, i32) {
    %c0_i32 = arith.constant 0 : i32
    %c0_i32_0 = arith.constant 0 : i32
    %c0_i32_1 = arith.constant 0 : i32
    return %c0_i32, %c0_i32_0 : i32, i32
  }
}

</mosaic_0001>

<bundles_post_ra>
// kernel: tpu_custom_call.1
= control target key start
LH: loop header
LB: loop body
LE: loop exit
PB: predicated region body
PF: predicated region fallthrough
CT: control target
= control target key end

     0   :  { %vm46_vm0 = vcmask 261120   ;;  %s1427_s0 = inlined_call_operand.vmem [shape: f32[16,32], index: 0, kind: input, shape index: {}]   ;;  %s1428_s1 = inlined_call_operand.vmem [shape: f32[1,32], index: 1, kind: input, shape index: {}]   ;;  %s1429_s2 = inlined_call_operand.vmem [shape: f32[1,32], index: 2, kind: input, shape index: {}]   ;;  %s1430_s3 = inlined_call_operand.vmem [shape: f32[32,96], index: 3, kind: input, shape index: {}]   ;;  %s1431_s4 = inlined_call_operand.vmem [shape: f32[32,32], index: 4, kind: input, shape index: {}]   ;;  %s1432_s5 = inlined_call_operand.vmem [shape: f32[1,32], index: 5, kind: input, shape index: {}]   ;;  %s1433_s6 = inlined_call_operand.vmem [shape: f32[1,32], index: 6, kind: input, shape index: {}]   ;;  %s1434_s7 = inlined_call_operand.vmem [shape: f32[1,32], index: 7, kind: input, shape index: {}]   ;;  %s1435_s8 = inlined_call_operand.vmem [shape: f32[32,128], index: 8, kind: input, shape index: {}]   ;;  %s1436_s9 = inlined_call_operand.vmem [shape: f32[1,128], index: 9, kind: input, shape index: {}]   ;;  %s1437_s10 = inlined_call_operand.vmem [shape: f32[128,32], index: 10, kind: input, shape index: {}]   ;;  %s1438_s11 = inlined_call_operand.vmem [shape: f32[1,32], index: 11, kind: input, shape index: {}]   ;;  %s1439_s12 = inlined_call_operand.hbm [shape: f32[16,32], index: 12, kind: output, shape index: {}]  }
   0x1   :  { %v1145_v0 = vld [vmem:[%s1427_s0] sm:$0xff] }
   0x2   :  { %v47_v1 = vsel %vm46_vm0, %v1145_v0, 0.0 }
   0x3   :  { %48 = vadd.xlane.f32.xlu0 %v47_v1 }
   0x4   :  { %17 = vsyncpa [#allocation3], 0  ;;  %v1152_v2 = vld [vmem:[%s1427_s0 + $0x8] sm:$0xff]  ;;  %v1065_v4 = vmov 32.0   ;;  %v111_v21 = vld [vmem:[%s1430_s3 + $0x18] sm:$0xff]  ;;  %s1068_s17 = smov 104  }
   0x5   :  { %v50_v3 = vsel %vm46_vm0, %v1152_v2, 0.0  ;;  %993 = vrcp.f32 %v1065_v4  ;;  %130 = vmatpush.msra.mxu0 %v111_v21  ;;  %v110_v22 = vld [vmem:[%s1430_s3 + $0x10] sm:$0xff]  ;;  %v109_v23 = vld [vmem:[%s1430_s3 + $0x8] sm:$0xff]  ;;  %v108_v24 = vld [vmem:[%s1430_s3] sm:$0xff]  ;;  %s1069_s18 = smov 96   ;;  %vm179_vm8 = vcmask 64512  }
   0x6   :  { %v986_v39 = vld [vmem:[%s1428_s1] ss:$0 sm:$0xff]  ;;  %s1066_s1 = smov 112   ;;  %v1070_v21 = vmov 0.0   ;;  %s1071_s19 = smov 64   ;;  %vm695_vm10 = vcmask 130048  }
   0x7   :  { %131 = vmatpush.msra.mxu0 %v110_v22  ;;  %v987_v43 = vld [vmem:[%s1429_s2] ss:$0 sm:$0xff]  ;;  %s1067_s2 = smov 120   ;;  %s1072_s20 = smov 8   ;;  %vm697_vm11 = vcmask 195584  }
   0x8   :  { %s1073_s21 = smov 16   ;;  %s1074_s22 = smov 24  }
   0x9   :  { %132 = vmatpush.msra.mxu0 %v109_v23  ;;  %s1075_s26 = smov [#allocation2]  }
   0xa   :  { %s915_s27 = sshll.u32 %s1075_s26, 4  ;;  %s916_s27 = int_to_ptr.vmem [resolvable:$true] %s915_s27 }
   0xb   :  { %51 = vadd.xlane.f32.xlu0 %v50_v3  ;;  %v994_v5 = vpop.eup %993  ;;  %133 = vmatpush.msra.mxu0 %v108_v24 }
   0xc   :  { %v54_v6 = vmul.f32 32.0, %v994_v5  ;;  %vm58_vm1 = vweird.f32 %v994_v5 }
   0xe   :  { %v55_v7 = vsub.f32 1.0, %v54_v6 }
  0x10   :  { %v56_v8 = vmul.f32 %v994_v5, %v55_v7 }
  0x12   :  { %v57_v9 = vadd.f32 %v994_v5, %v56_v8 }
  0x14   :  { %v1156_v10 = vsel %vm58_vm1, %v994_v5, %v57_v9 }
  0x76   :  { %v49_v11 = vpop.xlane.xlu0 %48 }
  0x77   :  { %v60_v12 = vmul.f32 %v1156_v10, %v49_v11 }
  0x79   :  { %v62_v13 = vsub.f32 %v1145_v0, %v60_v12 }
  0x7b   :  { %v64_v14 = vmul.f32 %v62_v13, %v62_v13 }
  0x7d   :  { %v66_v15 = vsel %vm46_vm0, %v64_v14, 0.0 }
  0x7e   :  { %67 = vadd.xlane.f32.xlu1 %v66_v15  ;;  %v52_v16 = vpop.xlane.xlu0 %51 }
  0x7f   :  { %v61_v17 = vmul.f32 %v1156_v10, %v52_v16 }
  0x81   :  { %v63_v18 = vsub.f32 %v1152_v2, %v61_v17  ;;  %v171_v17 = vlaneseq }
  0x83   :  { %v65_v19 = vmul.f32 %v63_v18, %v63_v18 }
  0x85   :  { %v69_v20 = vsel %vm46_vm0, %v65_v19, 0.0  ;;  %v172_v19 = vshrl.u32 %v171_v17, 7 }
  0x86   :  { %70 = vadd.xlane.f32.xlu1 %v69_v20  ;;  %v174_v20 = vand.u32 127, %v171_v17 }
  0x88   :  { %vm175_vm9 = vcmp.gt.s32.totalorder %v174_v20, %v172_v19 }
  0x89   :  { %v176_v22 = vsel %vm175_vm9, -1e+30, %v1070_v21 }
  0xf1   :  { %v68_v25 = vpop.xlane.xlu1 %67 }
  0xf2   :  { %v72_v26 = vmul.f32 %v68_v25, %v1156_v10 }
  0xf4   :  { %v74_v27 = vadd.f32 1e-05, %v72_v26 }
  0xf6   :  { %995 = vrsqrt.f32 %v74_v27  ;;  %vm82_vm3 = vweird.f32 %v74_v27 }
  0xf9   :  { %v71_v28 = vpop.xlane.xlu1 %70 }
  0xfa   :  { %v73_v29 = vmul.f32 %v71_v28, %v1156_v10 }
  0xfc   :  { %v996_v30 = vpop.eup %995  ;;  %v75_v31 = vadd.f32 1e-05, %v73_v29 }
  0xfd   :  { %v77_v32 = vmul.f32 %v996_v30, %v74_v27  ;;  %vm83_vm2 = vweird.f32 %v996_v30 }
  0xfe   :  { %997 = vrsqrt.f32 %v75_v31  ;;  %vm84_vm4 = vmor %vm82_vm3, %vm83_vm2  ;;  %vm92_vm5 = vweird.f32 %v75_v31 }
  0xff   :  { %v78_v33 = vmul.f32 %v996_v30, %v77_v32 }
 0x101   :  { %v79_v34 = vmul.f32 0.5, %v78_v33 }
 0x103   :  { %v80_v35 = vsub.f32 1.5, %v79_v34 }
 0x104   :  { %v998_v36 = vpop.eup %997 }
 0x105   :  { %v81_v37 = vmul.f32 %v996_v30, %v80_v35  ;;  %v87_v38 = vmul.f32 %v998_v36, %v75_v31  ;;  %vm93_vm6 = vweird.f32 %v998_v36 }
 0x106   :  { %vm94_vm7 = vmor %vm92_vm5, %vm93_vm6 }
 0x107   :  { %v85_v40 = vsel %vm84_vm4, %v996_v30, %v81_v37  ;;  %v88_v41 = vmul.f32 %v998_v36, %v87_v38 }
 0x108   :  { %v96_v42 = vmul.f32 %v85_v40, %v62_v13 }
 0x109   :  { %v89_v44 = vmul.f32 0.5, %v88_v41 }
 0x10a   :  { %v101_v45 = vmul.f32 %v986_v39, %v96_v42 }
 0x10b   :  { %v90_v46 = vsub.f32 1.5, %v89_v44 }
 0x10c   :  { %v106_v47 = vadd.f32 %v987_v43, %v101_v45 }
 0x10d   :  { %v91_v48 = vmul.f32 %v998_v36, %v90_v46 }
 0x10e   :  { %929 = vmatmul.msk.f32.vlgmr.msra.gmra.mxu0 %vm46_vm0, %v106_v47 }
 0x10f   :  { %v95_v49 = vsel %vm94_vm7, %v998_v36, %v91_v48 }
 0x110   :  { %v97_v50 = vmul.f32 %v95_v49, %v63_v18 }
 0x112   :  { %v102_v51 = vmul.f32 %v986_v39, %v97_v50 }
 0x114   :  { %v107_v52 = vadd.f32 %v987_v43, %v102_v51 }
 0x116   :  { %930 = vmatmul.msk.f32.gmra.mxu0 %vm46_vm0, %v107_v52 }
 0x18b   :  { %v1186_v53 = vpop.f32.mrf.mxu0 }
 0x18c   :  { %160 = vrot.lane.b32.xlu0 %v1186_v53, %s1066_s1  ;;  %158 = vrot.lane.b32.xlu2 %v1186_v53, %s1067_s2  ;;  %v141_v55 = vmul.f32 0.35355338, %v1186_v53 }
 0x193   :  { %v1191_v54 = vpop.f32.mrf.mxu0 }
 0x194   :  { %162 = vrot.lane.b32.xlu2 %v1186_v53, %s1068_s17  ;;  %165 = vrot.lane.b32.xlu1 %v1191_v54, %s1067_s2  ;;  %v142_v60 = vmul.f32 0.35355338, %v1191_v54 }
 0x19c   :  { %169 = vrot.lane.b32.xlu2 %v1191_v54, %s1068_s17 }
 0x1a4   :  { %167 = vrot.lane.b32.xlu2 %v1191_v54, %s1066_s1 }
 0x1ac   :  { %177 = vrot.lane.b32.xlu2 %v1186_v53, %s1069_s18 }
 0x1b4   :  { %144 = vrot.lane.b32.xlu2 %v141_v55, %s1067_s2 }
 0x1e6   :  { %v1202_v56 = vpop.permute.xlu2 %158 }
 0x1e7   :  { %204 = vrot.lane.b32.xlu0 %v1202_v56, %s1069_s18 }
 0x1ee   :  { %v1205_v57 = vpop.permute.xlu2 %162 }
 0x1ef   :  { %v971_v58 = vpack.i.bf16 %v1202_v56, %v1205_v57  ;;  %148 = vrot.lane.b32.xlu0 %v141_v55, %s1068_s17  ;;  %256 = vrot.lane.b32.xlu1 %v1205_v57, %s1069_s18 }
 0x1f6   :  { %v1211_v59 = vpop.permute.xlu2 %169 }
 0x1f7   :  { %282 = vrot.lane.b32.xlu0 %v1191_v54, %s1069_s18  ;;  %146 = vrot.lane.b32.xlu1 %v141_v55, %s1066_s1 }
 0x1fe   :  { %v1216_v61 = vpop.permute.xlu2 %167  ;;  %v1218_v62 = vpop.permute.xlu0 %160 }
 0x1ff   :  { %360 = vrot.lane.b32.xlu0 %v1211_v59, %s1069_s18  ;;  %151 = vrot.lane.b32.xlu1 %v142_v60, %s1067_s2  ;;  %v976_v46 = vpack.i.bf16 %v1211_v59, %v1218_v62 }
 0x200   :  { %230 = vrot.lane.b32.xlu2 %v1218_v62, %s1069_s18 }
 0x206   :  { %v178_v63 = vpop.permute.xlu2 %177  ;;  %v1222_v1 = vpop.permute.xlu1 %165 }
 0x207   :  { %931 = vmatpush.xpose.msk.msra.mxu2 %vm179_vm8, %v178_v63  ;;  %153 = vrot.lane.b32.xlu0 %v142_v60, %s1066_s1 }
 0x208   :  { %334 = vrot.lane.b32.xlu1 %v1216_v61, %s1069_s18  ;;  %308 = vrot.lane.b32.xlu2 %v1222_v1, %s1069_s18 }
 0x20a   :  { %932 = vmatmul.msk.f32.vlgmr.msra.gmra.mxu2 %vm179_vm8, %v141_v55 }
 0x20e   :  { %v145_v3 = vpop.permute.xlu2 %144 }
 0x210   :  { %155 = vrot.lane.b32.xlu2 %v142_v60, %s1068_s17 }
 0x259   :  { %v205_v4 = vpop.permute.xlu0 %204 }
 0x25a   :  { %v231_v5 = vpop.permute.xlu2 %230  ;;  %933 = vmatpush.xpose.msk.msrb.mxu2 %vm179_vm8, %v205_v4 }
 0x25b   :  { %935 = vmatpush.xpose.msk.msra.mxu3 %vm179_vm8, %v231_v5 }
 0x25d   :  { %934 = vmatmul.msk.f32.vlgmr.msrb.gmra.mxu2 %vm179_vm8, %v145_v3 }
 0x261   :  { %v257_v6 = vpop.permute.xlu1 %256  ;;  %v149_v7 = vpop.permute.xlu0 %148 }
 0x262   :  { %v309_v8 = vpop.permute.xlu2 %308  ;;  %937 = vmatpush.xpose.msk.msra.mxu2 %vm179_vm8, %v257_v6 }
 0x263   :  { %941 = vmatpush.xpose.msk.msrb.mxu3 %vm179_vm8, %v309_v8 }
 0x265   :  { %938 = vmatmul.msk.f32.vlgmr.msra.gmra.mxu2 %vm179_vm8, %v149_v7 }
 0x269   :  { %v147_v9 = vpop.permute.xlu1 %146  ;;  %v283_v11 = vpop.permute.xlu0 %282 }
 0x26a   :  { %936 = vmatmul.msk.f32.vlgmr.msra.gmra.mxu3 %vm179_vm8, %v147_v9  ;;  %939 = vmatpush.xpose.msk.msrb.mxu2 %vm179_vm8, %v283_v11  ;;  %v156_v14 = vpop.permute.xlu2 %155 }
 0x26d   :  { %940 = vmatmul.msk.f32.vlgmr.msrb.gmra.mxu2 %vm179_vm8, %v142_v60 }
 0x271   :  { %v152_v12 = vpop.permute.xlu1 %151  ;;  %v361_v13 = vpop.permute.xlu0 %360 }
 0x272   :  { %942 = vmatmul.msk.f32.vlgmr.msrb.gmra.mxu3 %vm179_vm8, %v152_v12  ;;  %945 = vmatpush.xpose.msk.msra.mxu2 %vm179_vm8, %v361_v13 }
 0x275   :  { %946 = vmatmul.msk.f32.vlgmr.msra.gmra.mxu2 %vm179_vm8, %v156_v14 }
 0x279   :  { %v154_v16 = vpop.permute.xlu0 %153 }
 0x27a   :  { %v335_v15 = vpop.permute.xlu1 %334 }
 0x27b   :  { %943 = vmatpush.xpose.msk.msra.mxu3 %vm179_vm8, %v335_v15 }
 0x27e   :  { %944 = vmatmul.msk.f32.vlgmr.msra.gmra.mxu3 %vm179_vm8, %v154_v16 }
 0x28d   :  { %v201_v18 = vpop.f32.mrf.mxu2 }
 0x28e   :  { %v202_v40 = vadd.f32 %v201_v18, %v176_v22 }
 0x290   :  { %v386_v44 = vsel %vm179_vm8, %v202_v40, -inf }
 0x2e0   :  { %v227_v23 = vpop.f32.mrf.mxu2 }
 0x2e1   :  { %v228_v24 = vadd.f32 %v227_v23, %v176_v22 }
 0x2e3   :  { %v389_v25 = vsel %vm179_vm8, %v228_v24, -inf }
 0x2e4   :  { %390 = vmax.xlane.f32.xlu1 %v389_v25 }
 0x2e8   :  { %v279_v26 = vpop.f32.mrf.mxu2 }
 0x2e9   :  { %v280_v27 = vadd.f32 %v279_v26, %v176_v22 }
 0x2eb   :  { %v395_v28 = vsel %vm179_vm8, %v280_v27, -inf }
 0x2ec   :  { %396 = vmax.xlane.f32.xlu2 %v395_v28 }
 0x2ed   :  { %v253_v29 = vpop.f32.mrf.mxu3 }
 0x2ee   :  { %v254_v30 = vadd.f32 %v253_v29, %v176_v22 }
 0x2f0   :  { %v305_v31 = vpop.f32.mrf.mxu2  ;;  %v392_v32 = vsel %vm179_vm8, %v254_v30, -inf }
 0x2f1   :  { %393 = vmax.xlane.f32.xlu0 %v392_v32  ;;  %v1249_v39 = vadd.f32 %v305_v31, %v176_v22 }
 0x2f3   :  { %v398_v41 = vsel %vm179_vm8, %v1249_v39, -inf }
 0x2f5   :  { %v331_v33 = vpop.f32.mrf.mxu3 }
 0x2f6   :  { %v332_v34 = vadd.f32 %v331_v33, %v176_v22 }
 0x2f8   :  { %v383_v35 = vpop.f32.mrf.mxu2  ;;  %v401_v36 = vsel %vm179_vm8, %v332_v34, -inf }
 0x2f9   :  { %v384_v37 = vadd.f32 %v383_v35, %v176_v22  ;;  %402 = vmax.xlane.f32.xlu1 %v401_v36 }
 0x2fb   :  { %v407_v38 = vsel %vm179_vm8, %v384_v37, -inf }
 0x2fc   :  { %408 = vmax.xlane.f32.xlu2 %v407_v38 }
 0x301   :  { %v357_v42 = vpop.f32.mrf.mxu3  ;;  %399 = vmax.xlane.f32.xlu1 %v398_v41 }
 0x302   :  { %v358_v43 = vadd.f32 %v357_v42, %v176_v22 }
 0x304   :  { %387 = vmax.xlane.f32.xlu2 %v386_v44  ;;  %v404_v45 = vsel %vm179_vm8, %v358_v43, -inf }
 0x305   :  { %405 = vmax.xlane.f32.xlu0 %v404_v45 }
 0x31a   :  { %977 = vrot.lane.b32.xlu1 %v976_v46, %s1071_s19 }
 0x357   :  { %v391_v47 = vpop.xlane.xlu1 %390 }
 0x358   :  { %v411_v48 = vsub.f32 %v228_v24, %v391_v47 }
 0x35a   :  { %v420_v49 = vmul.f32 1.442695, %v411_v48 }
 0x35c   :  { %999 = vpow2.f32 %v420_v49 }
 0x35f   :  { %v397_v50 = vpop.xlane.xlu2 %396 }
 0x360   :  { %v413_v51 = vsub.f32 %v280_v27, %v397_v50 }
 0x362   :  { %v1258_v52 = vpop.eup %999  ;;  %v424_v55 = vmul.f32 1.442695, %v413_v51 }
 0x363   :  { %v437_v60 = vsel %vm179_vm8, %v1258_v52, 0.0 }
 0x364   :  { %1001 = vpow2.f32 %v424_v55  ;;  %438 = vadd.xlane.f32.xlu2 %v437_v60  ;;  %v394_v63 = vpop.xlane.xlu0 %393 }
 0x365   :  { %v412_v3 = vsub.f32 %v254_v30, %v394_v63 }
 0x367   :  { %v422_v59 = vmul.f32 1.442695, %v412_v3 }
 0x369   :  { %1003 = vpow2.f32 %v422_v59 }
 0x36a   :  { %v1262_v62 = vpop.eup %1001 }
 0x36b   :  { %v443_v4 = vsel %vm179_vm8, %v1262_v62, 0.0 }
 0x36c   :  { %v403_v5 = vpop.xlane.xlu1 %402  ;;  %444 = vadd.xlane.f32.xlu0 %v443_v4 }
 0x36d   :  { %v415_v6 = vsub.f32 %v332_v34, %v403_v5 }
 0x36f   :  { %v1266_v7 = vpop.eup %1003  ;;  %v428_v8 = vmul.f32 1.442695, %v415_v6  ;;  %v409_v12 = vpop.xlane.xlu2 %408 }
 0x370   :  { %v440_v9 = vsel %vm179_vm8, %v1266_v7, 0.0  ;;  %v417_v16 = vsub.f32 %v384_v37, %v409_v12 }
 0x371   :  { %1005 = vpow2.f32 %v428_v8  ;;  %441 = vadd.xlane.f32.xlu1 %v440_v9 }
 0x372   :  { %v432_v18 = vmul.f32 1.442695, %v417_v16  ;;  %v715_v16 = vld [vmem:[%s1431_s4 + $0x8] sm:$0xff] }
 0x374   :  { %v400_v20 = vpop.xlane.xlu1 %399 }
 0x375   :  { %v414_v29 = vsub.f32 %v1249_v39, %v400_v20 }
 0x377   :  { %v1270_v11 = vpop.eup %1005  ;;  %v388_v26 = vpop.xlane.xlu2 %387  ;;  %v426_v30 = vmul.f32 1.442695, %v414_v29  ;;  %v988_v29 = vld [vmem:[%s1432_s5] ss:$0 sm:$0xff] }
 0x378   :  { %v406_v13 = vpop.xlane.xlu0 %405  ;;  %v449_v14 = vsel %vm179_vm8, %v1270_v11, 0.0  ;;  %v410_v56 = vsub.f32 %v202_v40, %v388_v26 }
 0x379   :  { %v416_v15 = vsub.f32 %v358_v43, %v406_v13  ;;  %450 = vadd.xlane.f32.xlu1 %v449_v14  ;;  %v717_v14 = vld [vmem:[%s1431_s4 + $0x18] sm:$0xff] }
 0x37a   :  { %v418_v57 = vmul.f32 1.442695, %v410_v56 }
 0x37b   :  { %v430_v17 = vmul.f32 1.442695, %v416_v15  ;;  %v716_v15 = vld [vmem:[%s1431_s4 + $0x10] sm:$0xff] }
 0x37c   :  { %972 = vrot.lane.b32.xlu2 %v971_v58, %s1071_s19  ;;  %v981_v58 = vpack.i.bf16 %v1216_v61, %v1222_v1 }
 0x37d   :  { %1007 = vpow2.f32 %v430_v17  ;;  %v714_v17 = vld [vmem:[%s1431_s4] sm:$0xff]  ;;  %s917_s4 = sshll.u32 %s1439_s12, 4  ;;  %s918_s4 = int_to_ptr.hbm [resolvable:$true] %s917_s4 }
 0x37e   :  { %1009 = vpow2.f32 %v432_v18 }
 0x37f   :  { %1011 = vpow2.f32 %v418_v57 }
 0x380   :  { %1013 = vpow2.f32 %v426_v30 }
 0x383   :  { %v1278_v19 = vpop.eup %1007 }
 0x384   :  { %v452_v21 = vsel %vm179_vm8, %v1278_v19, 0.0  ;;  %v1010_v22 = vpop.eup %1009 }
 0x385   :  { %453 = vadd.xlane.f32.xlu0 %v452_v21  ;;  %v455_v24 = vsel %vm179_vm8, %v1010_v22, 0.0  ;;  %v1012_v27 = vpop.eup %1011 }
 0x386   :  { %v434_v28 = vsel %vm179_vm8, %v1012_v27, 0.0 }
 0x38c   :  { %v978_v23 = vpop.permute.xlu1 %977 }
 0x38d   :  { %456 = vadd.xlane.f32.xlu0 %v455_v24  ;;  %v979_v25 = vunpack.i.l.bf16 %v978_v23  ;;  %v980_v35 = vunpack.i.h.bf16 %v978_v23 }
 0x38f   :  { %547 = vmatpush.msra.mxu1 %v979_v25 }
 0x392   :  { %474 = vrot.lane.b32.xlu1 %v1186_v53, %s1071_s19  ;;  %v1014_v53 = vpop.eup %1013 }
 0x393   :  { %v446_v31 = vsel %vm179_vm8, %v1014_v53, 0.0 }
 0x39a   :  { %578 = vrot.lane.b32.xlu1 %v1191_v54, %s1071_s19 }
 0x3a1   :  { %982 = vrot.lane.b32.xlu0 %v981_v58, %s1071_s19 }
 0x3a5   :  { %435 = vadd.xlane.f32.xlu2 %v434_v28 }
 0x3cb   :  { %447 = vadd.xlane.f32.xlu0 %v446_v31 }
 0x3d7   :  { %v439_v32 = vpop.xlane.xlu2 %438 }
 0x3d8   :  { %1015 = vrcp.f32 %v439_v32 }
 0x3de   :  { %v1016_v54 = vpop.eup %1015 }
 0x3df   :  { %v973_v33 = vpop.permute.xlu2 %972  ;;  %v445_v34 = vpop.xlane.xlu0 %444  ;;  %v467_v36 = vmul.f32 %v1016_v54, %v1258_v52 }
 0x3e0   :  { %v974_v61 = vunpack.i.l.bf16 %v973_v33  ;;  %1017 = vrcp.f32 %v445_v34  ;;  %v975_v1 = vunpack.i.h.bf16 %v973_v33 }
 0x3e2   :  { %521 = vmatpush.msrb.mxu0 %v975_v1  ;;  %573 = vmatpush.msrb.mxu2 %v974_v61 }
 0x3e3   :  { %948 = vmatmul.msk.f32.vlgmr.msrb.gmra.mxu0 %vm179_vm8, %v467_v36 }
 0x3e4   :  { %677 = vmatpush.msra.mxu2 %v980_v35  ;;  %v442_v37 = vpop.xlane.xlu1 %441 }
 0x3e5   :  { %1019 = vrcp.f32 %v442_v37 }
 0x3e6   :  { %v1018_v38 = vpop.eup %1017 }
 0x3e7   :  { %v469_v39 = vmul.f32 %v1018_v38, %v1262_v62 }
 0x3e9   :  { %950 = vmatmul.msk.f32.vlgmr.msrb.gmra.mxu2 %vm179_vm8, %v469_v39 }
 0x3eb   :  { %v1020_v40 = vpop.eup %1019 }
 0x3ec   :  { %v468_v41 = vmul.f32 %v1020_v40, %v1266_v7  ;;  %v451_v43 = vpop.xlane.xlu1 %450 }
 0x3ee   :  { %949 = vmatmul.msk.f32.vlgmr.msra.gmra.mxu1 %vm179_vm8, %v468_v41 }
 0x3f8   :  { %v454_v42 = vpop.xlane.xlu0 %453 }
 0x400   :  { %v457_v44 = vpop.xlane.xlu0 %456 }
 0x401   :  { %1021 = vrcp.f32 %v457_v44  ;;  %v810_v44 = vld [vmem:[%s1435_s8 + $0x8] sm:$0xff] }
 0x402   :  { %1023 = vrcp.f32 %v451_v43  ;;  %v811_v43 = vld [vmem:[%s1435_s8 + $0x10] sm:$0xff] }
 0x403   :  { %1025 = vrcp.f32 %v454_v42  ;;  %v812_v42 = vld [vmem:[%s1435_s8 + $0x18] sm:$0xff] }
 0x404   :  { %v475_v45 = vpop.permute.xlu1 %474 }
 0x405   :  { %495 = vmatpush.msrb.mxu3 %v475_v45  ;;  %v809_v45 = vld [vmem:[%s1435_s8] sm:$0xff] }
 0x407   :  { %v1022_v46 = vpop.eup %1021 }
 0x408   :  { %v473_v47 = vmul.f32 %v1022_v46, %v1010_v22  ;;  %v1024_v49 = vpop.eup %1023 }
 0x409   :  { %v1026_v50 = vpop.eup %1025  ;;  %v471_v60 = vmul.f32 %v1024_v49, %v1270_v11 }
 0x40a   :  { %954 = vmatmul.msk.f32.vlgmr.msra.gmra.mxu2 %vm179_vm8, %v473_v47  ;;  %v472_v63 = vmul.f32 %v1026_v50, %v1278_v19 }
 0x40c   :  { %v579_v48 = vpop.permute.xlu1 %578 }
 0x40d   :  { %599 = vmatpush.msra.mxu3 %v579_v48 }
 0x413   :  { %v983_v51 = vpop.permute.xlu0 %982 }
 0x414   :  { %v984_v52 = vunpack.i.l.bf16 %v983_v51  ;;  %v985_v55 = vunpack.i.h.bf16 %v983_v51 }
 0x416   :  { %625 = vmatpush.msra.mxu0 %v984_v52  ;;  %651 = vmatpush.msrb.mxu1 %v985_v55 }
 0x417   :  { %952 = vmatmul.msk.f32.vlgmr.msra.gmra.mxu0 %vm179_vm8, %v471_v60  ;;  %953 = vmatmul.msk.f32.vlgmr.msrb.gmra.mxu1 %vm179_vm8, %v472_v63  ;;  %v989_v63 = vld [vmem:[%s1433_s6] ss:$0 sm:$0xff] }
 0x418   :  { %v436_v3 = vpop.xlane.xlu2 %435  ;;  %835 = vmatpush.msrb.mxu0 %v812_v42 }
 0x419   :  { %1027 = vrcp.f32 %v436_v3 }
 0x41a   :  { %836 = vmatpush.msrb.mxu0 %v811_v43 }
 0x41c   :  { %837 = vmatpush.msrb.mxu0 %v810_v44 }
 0x41e   :  { %838 = vmatpush.msrb.mxu0 %v809_v45 }
 0x41f   :  { %v1028_v59 = vpop.eup %1027 }
 0x420   :  { %v466_v62 = vmul.f32 %v1028_v59, %v1012_v27 }
 0x422   :  { %947 = vmatmul.msk.f32.vlgmr.msrb.gmra.mxu3 %vm179_vm8, %v466_v62  ;;  %v990_v62 = vld [vmem:[%s1434_s7] ss:$0 sm:$0xff] }
 0x423   :  { %740 = vmatpush.msrb.mxu3 %v717_v14 }
 0x425   :  { %741 = vmatpush.msrb.mxu3 %v716_v15 }
 0x427   :  { %742 = vmatpush.msrb.mxu3 %v715_v16 }
 0x429   :  { %743 = vmatpush.msrb.mxu3 %v714_v17 }
 0x43e   :  { %v448_v4 = vpop.xlane.xlu0 %447 }
 0x43f   :  { %1029 = vrcp.f32 %v448_v4 }
 0x445   :  { %v1030_v5 = vpop.eup %1029 }
 0x446   :  { %v470_v6 = vmul.f32 %v1030_v5, %v1014_v53 }
 0x448   :  { %951 = vmatmul.msk.f32.vlgmr.msra.gmra.mxu3 %vm179_vm8, %v470_v6  ;;  %v879_v6 = vld [vmem:[%s1437_s10 + $0x78] sm:$0xff] }
 0x449   :  { %884 = vmatpush.msra.mxu1 %v879_v6 }
 0x460   :  { %v523_v7 = vpop.f32.mrf.mxu0 }
 0x461   :  { %683 = vrot.lane.b32.xlu1 %v523_v7, %s1072_s20  ;;  %v878_v7 = vld [vmem:[%s1437_s10 + $0x70] sm:$0xff] }
 0x462   :  { %885 = vmatpush.msra.mxu1 %v878_v7 }
 0x46b   :  { %v549_v8 = vpop.f32.mrf.mxu1 }
 0x46c   :  { %687 = vrot.lane.b32.xlu1 %v549_v8, %s1073_s21  ;;  %v575_v9 = vpop.f32.mrf.mxu2  ;;  %v877_v8 = vld [vmem:[%s1437_s10 + $0x68] sm:$0xff] }
 0x46d   :  { %691 = vrot.lane.b32.xlu2 %v575_v9, %s1074_s22  ;;  %886 = vmatpush.msra.mxu1 %v877_v8 }
 0x48d   :  { %v679_v13 = vpop.f32.mrf.mxu2 }
 0x494   :  { %v627_v11 = vpop.f32.mrf.mxu0  ;;  %v653_v12 = vpop.f32.mrf.mxu1 }
 0x495   :  { %704 = vrot.lane.b32.xlu0 %v653_v12, %s1073_s21  ;;  %700 = vrot.lane.b32.xlu1 %v627_v11, %s1072_s20  ;;  %v876_v12 = vld [vmem:[%s1437_s10 + $0x60] sm:$0xff] }
 0x496   :  { %887 = vmatpush.msra.mxu1 %v876_v12 }
 0x49d   :  { %708 = vrot.lane.b32.xlu1 %v679_v13, %s1074_s22 }
 0x4a5   :  { %v497_v19 = vpop.f32.mrf.mxu3 }
 0x4c7   :  { %v692_v22 = vpop.permute.xlu2 %691 }
 0x4cb   :  { %v601_v26 = vpop.f32.mrf.mxu3 }
 0x4d3   :  { %v684_v18 = vpop.permute.xlu1 %683 }
 0x4d4   :  { %v694_v20 = vsel %vm179_vm8, %v497_v19, %v684_v18 }
 0x4de   :  { %v688_v21 = vpop.permute.xlu1 %687 }
 0x4df   :  { %v696_v23 = vsel %vm695_vm10, %v694_v20, %v688_v21 }
 0x4e0   :  { %v698_v24 = vsel %vm697_vm11, %v696_v23, %v692_v22  ;;  %v875_v23 = vld [vmem:[%s1437_s10 + $0x58] sm:$0xff] }
 0x4e1   :  { %955 = vmatmul.msk.f32.vlgmr.msrb.gmra.mxu3 %vm46_vm0, %v698_v24  ;;  %888 = vmatpush.msra.mxu1 %v875_v23  ;;  %v874_v24 = vld [vmem:[%s1437_s10 + $0x50] sm:$0xff] }
 0x4e3   :  { %889 = vmatpush.msra.mxu1 %v874_v24 }
 0x507   :  { %v701_v25 = vpop.permute.xlu1 %700  ;;  %v705_v56 = vpop.permute.xlu0 %704 }
 0x508   :  { %v711_v57 = vsel %vm179_vm8, %v601_v26, %v701_v25  ;;  %v873_v25 = vld [vmem:[%s1437_s10 + $0x48] sm:$0xff]  ;;  %v872_v26 = vld [vmem:[%s1437_s10 + $0x40] sm:$0xff] }
 0x509   :  { %v712_v27 = vsel %vm695_vm10, %v711_v57, %v705_v56  ;;  %890 = vmatpush.msra.mxu1 %v873_v25  ;;  %v871_v56 = vld [vmem:[%s1437_s10 + $0x38] sm:$0xff]  ;;  %v870_v57 = vld [vmem:[%s1437_s10 + $0x30] sm:$0xff] }
 0x50b   :  { %891 = vmatpush.msra.mxu1 %v872_v26 }
 0x50d   :  { %892 = vmatpush.msra.mxu1 %v871_v56 }
 0x50f   :  { %v709_v58 = vpop.permute.xlu1 %708  ;;  %893 = vmatpush.msra.mxu1 %v870_v57 }
 0x510   :  { %v713_v28 = vsel %vm697_vm11, %v712_v27, %v709_v58  ;;  %v869_v58 = vld [vmem:[%s1437_s10 + $0x28] sm:$0xff]  ;;  %v868_v27 = vld [vmem:[%s1437_s10 + $0x20] sm:$0xff] }
 0x511   :  { %956 = vmatmul.msk.f32.gmra.mxu3 %vm46_vm0, %v713_v28  ;;  %894 = vmatpush.msra.mxu1 %v869_v58  ;;  %v867_v28 = vld [vmem:[%s1437_s10 + $0x18] sm:$0xff] }
 0x513   :  { %895 = vmatpush.msra.mxu1 %v868_v27 }
 0x515   :  { %896 = vmatpush.msra.mxu1 %v867_v28 }
 0x564   :  { %v745_v30 = vpop.f32.mrf.mxu3 }
 0x565   :  { %v746_v53 = vadd.f32 %v988_v29, %v745_v30  ;;  %v865_v30 = vld [vmem:[%s1437_s10 + $0x8] sm:$0xff] }
 0x567   :  { %v1328_v31 = vadd.f32 %v746_v53, %v1145_v0  ;;  %v864_v53 = vld [vmem:[%s1437_s10] sm:$0xff] }
 0x569   :  { %v755_v32 = vsel %vm46_vm0, %v1328_v31, 0.0 }
 0x56a   :  { %756 = vadd.xlane.f32.xlu1 %v755_v32  ;;  %v991_v32 = vld [vmem:[%s1436_s9] ss:$0 sm:$0xff] }
 0x594   :  { %v748_v54 = vpop.f32.mrf.mxu3 }
 0x595   :  { %v749_v33 = vadd.f32 %v988_v29, %v748_v54  ;;  %v866_v29 = vld [vmem:[%s1437_s10 + $0x10] sm:$0xff] }
 0x596   :  { %897 = vmatpush.msra.mxu1 %v866_v29 }
 0x597   :  { %v1333_v34 = vadd.f32 %v749_v33, %v1152_v2 }
 0x598   :  { %898 = vmatpush.msra.mxu1 %v865_v30 }
 0x599   :  { %v758_v61 = vsel %vm46_vm0, %v1333_v34, 0.0 }
 0x59a   :  { %759 = vadd.xlane.f32.xlu2 %v758_v61  ;;  %899 = vmatpush.msra.mxu1 %v864_v53 }
 0x5dd   :  { %v757_v1 = vpop.xlane.xlu1 %756 }
 0x5de   :  { %v761_v35 = vmul.f32 %v757_v1, %v1156_v10 }
 0x5e0   :  { %v763_v36 = vsub.f32 %v1328_v31, %v761_v35 }
 0x5e2   :  { %v765_v0 = vmul.f32 %v763_v36, %v763_v36 }
 0x5e4   :  { %v767_v37 = vsel %vm46_vm0, %v765_v0, 0.0 }
 0x5e5   :  { %768 = vadd.xlane.f32.xlu0 %v767_v37 }
 0x60d   :  { %v760_v38 = vpop.xlane.xlu2 %759 }
 0x60e   :  { %v762_v39 = vmul.f32 %v760_v38, %v1156_v10 }
 0x610   :  { %v764_v40 = vsub.f32 %v1333_v34, %v762_v39 }
 0x612   :  { %v766_v2 = vmul.f32 %v764_v40, %v764_v40 }
 0x614   :  { %v770_v41 = vsel %vm46_vm0, %v766_v2, 0.0 }
 0x615   :  { %771 = vadd.xlane.f32.xlu1 %v770_v41 }
 0x658   :  { %v769_v46 = vpop.xlane.xlu0 %768 }
 0x659   :  { %v773_v47 = vmul.f32 %v769_v46, %v1156_v10 }
 0x65b   :  { %v775_v48 = vadd.f32 1e-05, %v773_v47 }
 0x65d   :  { %1031 = vrsqrt.f32 %v775_v48  ;;  %vm783_vm13 = vweird.f32 %v775_v48 }
 0x663   :  { %v1032_v49 = vpop.eup %1031 }
 0x664   :  { %v778_v50 = vmul.f32 %v1032_v49, %v775_v48  ;;  %vm784_vm12 = vweird.f32 %v1032_v49 }
 0x665   :  { %vm785_vm14 = vmor %vm783_vm13, %vm784_vm12 }
 0x666   :  { %v779_v51 = vmul.f32 %v1032_v49, %v778_v50 }
 0x668   :  { %v780_v52 = vmul.f32 0.5, %v779_v51  ;;  %v992_v51 = vld [vmem:[%s1438_s11] ss:$0 sm:$0xff]  ;;  %s1076_s11 = smov 128  }
 0x66a   :  { %v781_v55 = vsub.f32 1.5, %v780_v52 }
 0x66c   :  { %v782_v60 = vmul.f32 %v1032_v49, %v781_v55 }
 0x66e   :  { %v786_v3 = vsel %vm785_vm14, %v1032_v49, %v782_v60 }
 0x66f   :  { %v797_v59 = vmul.f32 %v786_v3, %v763_v36 }
 0x671   :  { %v802_v4 = vmul.f32 %v989_v63, %v797_v59 }
 0x673   :  { %v807_v5 = vadd.f32 %v990_v62, %v802_v4 }
 0x675   :  { %957 = vmatmul.msk.f32.vlgmr.msrb.gmra.mxu0 %vm46_vm0, %v807_v5 }
 0x688   :  { %v772_v9 = vpop.xlane.xlu1 %771 }
 0x689   :  { %v774_v11 = vmul.f32 %v772_v9, %v1156_v10 }
 0x68b   :  { %v776_v13 = vadd.f32 1e-05, %v774_v11 }
 0x68d   :  { %1033 = vrsqrt.f32 %v776_v13  ;;  %vm793_vm1 = vweird.f32 %v776_v13 }
 0x693   :  { %v1034_v14 = vpop.eup %1033 }
 0x694   :  { %v788_v15 = vmul.f32 %v1034_v14, %v776_v13  ;;  %vm794_vm15 = vweird.f32 %v1034_v14 }
 0x695   :  { %vm795_vm2 = vmor %vm793_vm1, %vm794_vm15 }
 0x696   :  { %v789_v16 = vmul.f32 %v1034_v14, %v788_v15 }
 0x698   :  { %v790_v17 = vmul.f32 0.5, %v789_v16 }
 0x69a   :  { %v791_v18 = vsub.f32 1.5, %v790_v17 }
 0x69c   :  { %v792_v19 = vmul.f32 %v1034_v14, %v791_v18 }
 0x69e   :  { %v796_v20 = vsel %vm795_vm2, %v1034_v14, %v792_v19 }
 0x69f   :  { %v798_v21 = vmul.f32 %v796_v20, %v764_v40 }
 0x6a1   :  { %v803_v10 = vmul.f32 %v989_v63, %v798_v21 }
 0x6a3   :  { %v808_v22 = vadd.f32 %v990_v62, %v803_v10 }
 0x6a5   :  { %958 = vmatmul.msk.f32.gmra.mxu0 %vm46_vm0, %v808_v22 }
 0x6f2   :  { %v840_v54 = vpop.f32.mrf.mxu0 }
 0x6f3   :  { %v841_v33 = vadd.f32 %v991_v32, %v840_v54 }
 0x6f5   :  { %v848_v61 = vmul.f32 0.044715, %v841_v33  ;;  %v846_v38 = vmul.f32 0.5, %v841_v33 }
 0x6f7   :  { %v850_v1 = vmul.f32 %v848_v61, %v841_v33 }
 0x6f9   :  { %v852_v35 = vmul.f32 %v850_v1, %v841_v33 }
 0x6fb   :  { %v854_v36 = vadd.f32 %v852_v35, %v841_v33 }
 0x6fd   :  { %v856_v0 = vmul.f32 0.7978846, %v854_v36 }
 0x6ff   :  { %1035 = vtanh.f32 %v856_v0 }
 0x705   :  { %v1036_v37 = vpop.eup %1035 }
 0x706   :  { %v860_v39 = vadd.f32 1.0, %v1036_v37 }
 0x708   :  { %v862_v40 = vmul.f32 %v860_v39, %v846_v38 }
 0x70a   :  { %900 = vmatmul.f32.vlgmr.msra.gmra.mxu1 %v862_v40 }
 0x722   :  { %v843_v2 = vpop.f32.mrf.mxu0 }
 0x723   :  { %v844_v41 = vadd.f32 %v991_v32, %v843_v2 }
 0x725   :  { %v849_v42 = vmul.f32 0.044715, %v844_v41  ;;  %v847_v48 = vmul.f32 0.5, %v844_v41 }
 0x727   :  { %v851_v43 = vmul.f32 %v849_v42, %v844_v41 }
 0x729   :  { %v853_v44 = vmul.f32 %v851_v43, %v844_v41 }
 0x72b   :  { %v855_v45 = vadd.f32 %v853_v44, %v844_v41 }
 0x72d   :  { %v857_v46 = vmul.f32 0.7978846, %v855_v45 }
 0x72f   :  { %1037 = vtanh.f32 %v857_v46 }
 0x735   :  { %v1038_v47 = vpop.eup %1037 }
 0x736   :  { %v861_v49 = vadd.f32 1.0, %v1038_v47 }
 0x738   :  { %v863_v50 = vmul.f32 %v861_v49, %v847_v48 }
 0x73a   :  { %903 = vmatmul.f32.gmra.mxu1 %v863_v50 }
 0x787   :  { %v901_v52 = vpop.f32.mrf.mxu1 }
 0x788   :  { %v902_v55 = vadd.f32 %v992_v51, %v901_v52 }
 0x78a   :  { %v907_v60 = vadd.f32 %v902_v55, %v1328_v31 }
 0x78c   :  { %909 = vst.msk [vmem:[#allocation2] sm:$0xff] %vm46_vm0, %v907_v60 }
 0x7b7   :  { %v904_v63 = vpop.f32.mrf.mxu1 }
 0x7b8   :  { %v905_v3 = vadd.f32 %v992_v51, %v904_v63 }
 0x7ba   :  { %v908_v59 = vadd.f32 %v905_v3, %v1333_v34 }
 0x7bc   :  { %910 = vst.msk [vmem:[#allocation2 + $0x8] sm:$0xff] %vm46_vm0, %v908_v59 }
 0x7bd   :  { %923 = dma.vmem_to_hbm [thread:$0]  %s916_s27, 256, %s918_s4, [#allocation3], %s1076_s11, %s1076_s11, %s1072_s20  }
 0x7be   :  { %1063 = dma.done.wait [#allocation3], 256  }
 0x7bf   :  { %1064 = vsyncadd [#allocation3], 4294967040 }
 0x7c0   :  { %928 = vsyncpa [#allocation3], 1 }

</bundles_post_ra>
